<compile_context>
chip_gen: v7x
topology: tpu7x:2x2x1
jax: 0.10.0
libtpu: 0.0.40
codegen_flags: <defaults>
</compile_context>

<pallas_src>
import functools
import math

import jax
import jax.numpy as jnp
from jax import lax
from jax.experimental import pallas as pl
from jax.experimental.pallas import tpu as pltpu


def _round_up(n, m):
    return ((n + m - 1) // m) * m


def _mlp_autoencoder_kernel(
    x_ref,
    w1_ref, b1_ref,
    w2_ref, b2_ref,
    w34_ref, b34_ref,
    w5_ref, b5_ref,
    w6t_ref, b6r_ref,
    out_ref,
    *, chunk,
):
    """Fused encode+decode on one (tile, n_features) batch-major block.

    Weights (torch Linear layout, feature-major compute):
      wK_ref: (out_dim, in_dim), bK_ref: (out_dim, 1)   -> h = W @ h + b
      w6t_ref: (20, n_features) = W_de3.T, b6r_ref: (1, n_features)
    """
    tile = x_ref.shape[0]

    # Hoist the tiny weight loads out of the chunk loop (VMEM-resident blocks).
    w1 = w1_ref[...]; b1 = b1_ref[...]
    w2 = w2_ref[...]; b2 = b2_ref[...]
    w34 = w34_ref[...]; b34 = b34_ref[...]
    w5 = w5_ref[...]; b5 = b5_ref[...]
    w6t = w6t_ref[...]; b6r = b6r_ref[...]

    def run_chunk(start, size):
        xc = x_ref[pl.ds(start, size), :]                       # (size, F) batch-major
        # en1: fold batch-major -> feature-major into the GEMM:
        # contract the feature axis of both operands -> (20, size).
        h = lax.dot_general(w1, xc, (((1,), (1,)), ((), ())),
                            preferred_element_type=jnp.float32) + b1
        h = jnp.maximum(h, 0.0)                                 # en_act1
        h = jnp.dot(w2, h, preferred_element_type=jnp.float32) + b2
        h = jnp.maximum(h, 0.0)                                 # en_act2
        h = jnp.dot(w34, h, preferred_element_type=jnp.float32) + b34   # en3 + de1 fused
        h = jnp.maximum(h, 0.0)                                 # de_act1
        h = jnp.dot(w5, h, preferred_element_type=jnp.float32) + b5
        h = jnp.maximum(h, 0.0)                                 # de_act2
        # de3: fold feature-major -> batch-major back into the GEMM:
        # contract dim 0 of (20, size) with dim 0 of (20, F) -> (size, F).
        y = lax.dot_general(h, w6t, (((0,), (0,)), ((), ())),
                            preferred_element_type=jnp.float32) + b6r
        out_ref[pl.ds(start, size), :] = y.astype(out_ref.dtype)

    n_full, rem = divmod(tile, chunk)
    if n_full > 0:
        def body(c, carry):
            run_chunk(pl.multiple_of(c * chunk, chunk), chunk)
            return carry
        lax.fori_loop(0, n_full, body, 0, unroll=True)
    if rem:
        run_chunk(n_full * chunk, rem)


def fpga_prototype_forward(x, params, *, tile_b=8192, chunk_b=512):
    """Forward pass of FPGA_prototype_model.

    x: (B, n_features) float32 (natural row-major layout, no host-side reshuffle).
    params: 6 tuples (W, b) in torch Linear layout — W: (out, in), b: (out, 1),
            in order [en1, en2, en3, de1, de2, de3].
    """
    assert tile_b % 8 == 0 and chunk_b % 8 == 0
    B, F = x.shape
    x = x.astype(jnp.float32)
    (w1, b1), (w2, b2), (w3, b3), (w4, b4), (w5, b5), (w6, b6) = [
        (jnp.asarray(w, jnp.float32), jnp.asarray(b, jnp.float32)) for (w, b) in params
    ]

    # Algebraic fusion of en3 (10 -> z_dim) and de1 (z_dim -> 10); no ReLU between.
    hi = jax.lax.Precision.HIGHEST
    w34 = jnp.dot(w4, w3, precision=hi, preferred_element_type=jnp.float32)   # (10, 10)
    b34 = jnp.dot(w4, b3, precision=hi, preferred_element_type=jnp.float32) + b4
    w6t = w6.T                      # (20, F): last GEMM contracts dim 0 of both operands
    b6r = b6.reshape(1, F)          # row-vector bias for the batch-major output
    weights = [w1, b1, w2, b2, w34, b34, w5, b5, w6t, b6r]

    # --- batch tile selection ------------------------------------------------
    # As big as possible (amortize ~0.35us/step), but target >= 2 grid steps so
    # v7x's two TensorCores both get work.  Tiles are multiples of 8 (sublane)
    # unless they equal the full batch dim, which Pallas also accepts.
    target = _round_up(pl.cdiv(B, 2), chunk_b)
    tile = min(tile_b, max(chunk_b, target))
    tile = min(tile, B)
    chunk = min(chunk_b, tile)
    grid = (pl.cdiv(B, tile),)

    # --- VMEM budget (x/out blocks are lane-padded to 128 when F < 128) ------
    lane_padded_f = _round_up(F, 128)
    io_buf_bytes = tile * lane_padded_f * 4
    weight_bytes = sum(int(a.size) * 4 for a in weights)
    vmem_limit = min(4 * io_buf_bytes + 4 * weight_bytes + (8 << 20), 100 << 20)

    # --- cost hint for the XLA scheduler --------------------------------------
    layer_dims = [(F, 20), (20, 10), (10, 10), (10, 20), (20, F)]
    flops = 2 * B * sum(k * n for k, n in layer_dims)
    cost = pl.CostEstimate(flops=int(flops), transcendentals=0,
                           bytes_accessed=int(4 * 2 * B * F + weight_bytes))

    # x/out: tiled along batch (natural layout); weights/biases: whole-array
    # blocks with a constant index_map -> VMEM-resident across all grid steps.
    in_specs = [pl.BlockSpec((tile, F), lambda i: (i, 0))]
    in_specs += [pl.BlockSpec(w.shape, lambda i: (0, 0)) for w in weights]

    kernel = functools.partial(_mlp_autoencoder_kernel, chunk=chunk)
    out = pl.pallas_call(
        kernel,
        out_shape=jax.ShapeDtypeStruct((B, F), jnp.float32),
        grid=grid,
        in_specs=in_specs,
        out_specs=pl.BlockSpec((tile, F), lambda i: (i, 0)),
        compiler_params=pltpu.CompilerParams(
            dimension_semantics=("parallel",),
            vmem_limit_bytes=int(vmem_limit)),
        cost_estimate=cost,
    )(x, *weights)
    return out


def init_params(key, n_features, z_dim):
    """Deterministic init matching FPGA_prototype_model layer shapes.
    Torch layout: W (out_dim, in_dim), b (out_dim, 1)."""
    dims = [
        (20, n_features),  # en1
        (10, 20),          # en2
        (z_dim, 10),       # en3
        (10, z_dim),       # de1
        (20, 10),          # de2
        (n_features, 20),  # de3
    ]
    params = []
    for i, (dout, din) in enumerate(dims):
        kw, kb = jax.random.split(jax.random.fold_in(key, i))
        bound = 1.0 / math.sqrt(din)
        w = jax.random.uniform(kw, (dout, din), jnp.float32, -bound, bound)
        b = jax.random.uniform(kb, (dout, 1), jnp.float32, -bound, bound)
        params.append((w, b))
    return params


def reference_forward(x, params):
    """Plain-JAX reference with identical semantics (unfused, batch-major)."""
    h = x.astype(jnp.float32)
    hi = jax.lax.Precision.HIGHEST
    for i, (w, b) in enumerate(params):
        h = jnp.dot(h, w.T, precision=hi) + b.reshape(1, -1)
        if i not in (2, 5):  # no ReLU after en3 (latent) or de3 (output)
            h = jnp.maximum(h, 0.0)
    return h


if __name__ == "__main__":
    n_features = 16
    z_dim = 4

    key = jax.random.PRNGKey(0)
    kx, kp = jax.random.split(key)
    params = init_params(kp, n_features, z_dim)

    # 1) Tiny batch: single grid step, single chunk, block == full array dims.
    x_small = jax.random.normal(kx, (8, n_features), dtype=jnp.float32)
    out_small = jax.block_until_ready(fpga_prototype_forward(x_small, params))
    ref_small = reference_forward(x_small, params)
    assert out_small.shape == x_small.shape
    assert jnp.allclose(out_small, ref_small, atol=1e-5, rtol=1e-5)

    # 2) Multi-step pipelined grid with a masked (non-divisible) edge block and
    #    a batch that is not a multiple of 8.
    x_mid = jax.random.normal(jax.random.fold_in(kx, 1), (1337, n_features),
                              dtype=jnp.float32)
    out_mid = jax.block_until_ready(fpga_prototype_forward(x_mid, params))
    ref_mid = reference_forward(x_mid, params)
    assert out_mid.shape == x_mid.shape
    assert jnp.allclose(out_mid, ref_mid, atol=1e-5, rtol=1e-5)

    # 3) In-kernel remainder-chunk path (tile not a multiple of chunk_b).
    x_rem = jax.random.normal(jax.random.fold_in(kx, 2), (300, n_features),
                              dtype=jnp.float32)
    out_rem = jax.block_until_ready(
        fpga_prototype_forward(x_rem, params, tile_b=192, chunk_b=128))
    ref_rem = reference_forward(x_rem, params)
    assert out_rem.shape == x_rem.shape
    assert jnp.allclose(out_rem, ref_rem, atol=1e-5, rtol=1e-5)

    print("KERNEL_OK")
</pallas_src>

<mosaic_0001>
module attributes {stable_mosaic.version = 11 : i64} {
  func.func @_mlp_autoencoder_kernel(%arg0: i32, %arg1: memref<8x16xf32, #tpu.memory_space<vmem>>, %arg2: memref<20x16xf32, #tpu.memory_space<vmem>>, %arg3: memref<20x1xf32, #tpu.memory_space<vmem>>, %arg4: memref<10x20xf32, #tpu.memory_space<vmem>>, %arg5: memref<10x1xf32, #tpu.memory_space<vmem>>, %arg6: memref<10x10xf32, #tpu.memory_space<vmem>>, %arg7: memref<10x1xf32, #tpu.memory_space<vmem>>, %arg8: memref<20x10xf32, #tpu.memory_space<vmem>>, %arg9: memref<20x1xf32, #tpu.memory_space<vmem>>, %arg10: memref<20x16xf32, #tpu.memory_space<vmem>>, %arg11: memref<1x16xf32, #tpu.memory_space<vmem>>, %arg12: memref<8x16xf32, #tpu.memory_space<vmem>>) attributes {dimension_semantics = [#tpu.dimension_semantics<parallel>], iteration_bounds = array<i64: 1>, scalar_prefetch = 0 : i64, scratch_operands = 0 : i64, tpu.core_type = #tpu.core_type<tc>, window_params = [{transform_indices = @transform_0, window_bounds = array<i64: 8, 16>}, {pipeline_mode = #tpu.pipeline_mode<synchronous>, transform_indices = @transform_1, window_bounds = array<i64: 20, 16>}, {pipeline_mode = #tpu.pipeline_mode<synchronous>, transform_indices = @transform_2, window_bounds = array<i64: 20, 1>}, {pipeline_mode = #tpu.pipeline_mode<synchronous>, transform_indices = @transform_3, window_bounds = array<i64: 10, 20>}, {pipeline_mode = #tpu.pipeline_mode<synchronous>, transform_indices = @transform_4, window_bounds = array<i64: 10, 1>}, {pipeline_mode = #tpu.pipeline_mode<synchronous>, transform_indices = @transform_5, window_bounds = array<i64: 10, 10>}, {pipeline_mode = #tpu.pipeline_mode<synchronous>, transform_indices = @transform_6, window_bounds = array<i64: 10, 1>}, {pipeline_mode = #tpu.pipeline_mode<synchronous>, transform_indices = @transform_7, window_bounds = array<i64: 20, 10>}, {pipeline_mode = #tpu.pipeline_mode<synchronous>, transform_indices = @transform_8, window_bounds = array<i64: 20, 1>}, {pipeline_mode = #tpu.pipeline_mode<synchronous>, transform_indices = @transform_9, window_bounds = array<i64: 20, 16>}, {pipeline_mode = #tpu.pipeline_mode<synchronous>, transform_indices = @transform_10, window_bounds = array<i64: 1, 16>}, {transform_indices = @transform_11, window_bounds = array<i64: 8, 16>}]} {
    %c0 = arith.constant 0 : index
    %c0_0 = arith.constant 0 : index
    %0 = vector.load %arg2[%c0, %c0_0] : memref<20x16xf32, #tpu.memory_space<vmem>>, vector<20x16xf32>
    %c0_1 = arith.constant 0 : index
    %c0_2 = arith.constant 0 : index
    %1 = vector.load %arg3[%c0_1, %c0_2] : memref<20x1xf32, #tpu.memory_space<vmem>>, vector<20x1xf32>
    %c0_3 = arith.constant 0 : index
    %c0_4 = arith.constant 0 : index
    %2 = vector.load %arg4[%c0_3, %c0_4] : memref<10x20xf32, #tpu.memory_space<vmem>>, vector<10x20xf32>
    %c0_5 = arith.constant 0 : index
    %c0_6 = arith.constant 0 : index
    %3 = vector.load %arg5[%c0_5, %c0_6] : memref<10x1xf32, #tpu.memory_space<vmem>>, vector<10x1xf32>
    %c0_7 = arith.constant 0 : index
    %c0_8 = arith.constant 0 : index
    %4 = vector.load %arg6[%c0_7, %c0_8] : memref<10x10xf32, #tpu.memory_space<vmem>>, vector<10x10xf32>
    %c0_9 = arith.constant 0 : index
    %c0_10 = arith.constant 0 : index
    %5 = vector.load %arg7[%c0_9, %c0_10] : memref<10x1xf32, #tpu.memory_space<vmem>>, vector<10x1xf32>
    %c0_11 = arith.constant 0 : index
    %c0_12 = arith.constant 0 : index
    %6 = vector.load %arg8[%c0_11, %c0_12] : memref<20x10xf32, #tpu.memory_space<vmem>>, vector<20x10xf32>
    %c0_13 = arith.constant 0 : index
    %c0_14 = arith.constant 0 : index
    %7 = vector.load %arg9[%c0_13, %c0_14] : memref<20x1xf32, #tpu.memory_space<vmem>>, vector<20x1xf32>
    %c0_15 = arith.constant 0 : index
    %c0_16 = arith.constant 0 : index
    %8 = vector.load %arg10[%c0_15, %c0_16] : memref<20x16xf32, #tpu.memory_space<vmem>>, vector<20x16xf32>
    %c0_17 = arith.constant 0 : index
    %c0_18 = arith.constant 0 : index
    %9 = vector.load %arg11[%c0_17, %c0_18] : memref<1x16xf32, #tpu.memory_space<vmem>>, vector<1x16xf32>
    %c0_i32 = arith.constant 0 : i32
    %c8_i32 = arith.constant 8 : i32
    %10 = arith.muli %c0_i32, %c8_i32 : i32
    %11 = tpu.assume_multiple %10, 8 : i32
    %12 = arith.index_cast %11 : i32 to index
    %c0_19 = arith.constant 0 : index
    %13 = vector.load %arg1[%12, %c0_19] : memref<8x16xf32, #tpu.memory_space<vmem>>, vector<8x16xf32>
    %cst = arith.constant dense<0.000000e+00> : vector<20x8xf32>
    %14 = tpu.matmul %0, %13, %cst {dimension_numbers = #tpu.dot_dimension_numbers<[1], [1], [0], [0], [0, 0, 1, 0], [], []>} : vector<20x16xf32>, vector<8x16xf32>, vector<20x8xf32> -> vector<20x8xf32>
    %15 = vector.broadcast %1 : vector<20x1xf32> to vector<20x8xf32>
    %16 = arith.addf %14, %15 : vector<20x8xf32>
    %cst_20 = arith.constant 0.000000e+00 : f32
    %17 = vector.broadcast %cst_20 : f32 to vector<20x8xf32>
    %18 = arith.maximumf %16, %17 : vector<20x8xf32>
    %cst_21 = arith.constant dense<0.000000e+00> : vector<10x8xf32>
    %19 = tpu.matmul %2, %18, %cst_21 {dimension_numbers = #tpu.dot_dimension_numbers<[1], [0], [0], [1], [0, 0, 1, 1], [], []>} : vector<10x20xf32>, vector<20x8xf32>, vector<10x8xf32> -> vector<10x8xf32>
    %20 = vector.broadcast %3 : vector<10x1xf32> to vector<10x8xf32>
    %21 = arith.addf %19, %20 : vector<10x8xf32>
    %cst_22 = arith.constant 0.000000e+00 : f32
    %22 = vector.broadcast %cst_22 : f32 to vector<10x8xf32>
    %23 = arith.maximumf %21, %22 : vector<10x8xf32>
    %cst_23 = arith.constant dense<0.000000e+00> : vector<10x8xf32>
    %24 = tpu.matmul %4, %23, %cst_23 {dimension_numbers = #tpu.dot_dimension_numbers<[1], [0], [0], [1], [0, 0, 1, 1], [], []>} : vector<10x10xf32>, vector<10x8xf32>, vector<10x8xf32> -> vector<10x8xf32>
    %25 = vector.broadcast %5 : vector<10x1xf32> to vector<10x8xf32>
    %26 = arith.addf %24, %25 : vector<10x8xf32>
    %cst_24 = arith.constant 0.000000e+00 : f32
    %27 = vector.broadcast %cst_24 : f32 to vector<10x8xf32>
    %28 = arith.maximumf %26, %27 : vector<10x8xf32>
    %cst_25 = arith.constant dense<0.000000e+00> : vector<20x8xf32>
    %29 = tpu.matmul %6, %28, %cst_25 {dimension_numbers = #tpu.dot_dimension_numbers<[1], [0], [0], [1], [0, 0, 1, 1], [], []>} : vector<20x10xf32>, vector<10x8xf32>, vector<20x8xf32> -> vector<20x8xf32>
    %30 = vector.broadcast %7 : vector<20x1xf32> to vector<20x8xf32>
    %31 = arith.addf %29, %30 : vector<20x8xf32>
    %cst_26 = arith.constant 0.000000e+00 : f32
    %32 = vector.broadcast %cst_26 : f32 to vector<20x8xf32>
    %33 = arith.maximumf %31, %32 : vector<20x8xf32>
    %cst_27 = arith.constant dense<0.000000e+00> : vector<8x16xf32>
    %34 = tpu.matmul %33, %8, %cst_27 {dimension_numbers = #tpu.dot_dimension_numbers<[0], [0], [1], [1], [0, 1, 1, 1], [], []>} : vector<20x8xf32>, vector<20x16xf32>, vector<8x16xf32> -> vector<8x16xf32>
    %35 = vector.broadcast %9 : vector<1x16xf32> to vector<8x16xf32>
    %36 = arith.addf %34, %35 : vector<8x16xf32>
    %37 = arith.index_cast %11 : i32 to index
    %c0_28 = arith.constant 0 : index
    %38 = vector.load %arg12[%37, %c0_28] : memref<8x16xf32, #tpu.memory_space<vmem>>, vector<8x16xf32>
    tpu.vector_store %arg12[%37, %c0_28], %36 {strides = array<i32>} : memref<8x16xf32, #tpu.memory_space<vmem>>, vector<8x16xf32>,
    %c1_i32 = arith.constant 1 : i32
    return
  }
  func.func @transform_0(%arg0: i32) -> (i32, i32) {
    %c0_i32 = arith.constant 0 : i32
    %c0_i32_0 = arith.constant 0 : i32
    return %arg0, %c0_i32 : i32, i32
  }
  func.func @transform_1(%arg0: i32) -> (i32, i32) {
    %c0_i32 = arith.constant 0 : i32
    %c0_i32_0 = arith.constant 0 : i32
    %c0_i32_1 = arith.constant 0 : i32
    return %c0_i32, %c0_i32_0 : i32, i32
  }
  func.func @transform_2(%arg0: i32) -> (i32, i32) {
    %c0_i32 = arith.constant 0 : i32
    %c0_i32_0 = arith.constant 0 : i32
    %c0_i32_1 = arith.constant 0 : i32
    return %c0_i32, %c0_i32_0 : i32, i32
  }
  func.func @transform_3(%arg0: i32) -> (i32, i32) {
    %c0_i32 = arith.constant 0 : i32
    %c0_i32_0 = arith.constant 0 : i32
    %c0_i32_1 = arith.constant 0 : i32
    return %c0_i32, %c0_i32_0 : i32, i32
  }
  func.func @transform_4(%arg0: i32) -> (i32, i32) {
    %c0_i32 = arith.constant 0 : i32
    %c0_i32_0 = arith.constant 0 : i32
    %c0_i32_1 = arith.constant 0 : i32
    return %c0_i32, %c0_i32_0 : i32, i32
  }
  func.func @transform_5(%arg0: i32) -> (i32, i32) {
    %c0_i32 = arith.constant 0 : i32
    %c0_i32_0 = arith.constant 0 : i32
    %c0_i32_1 = arith.constant 0 : i32
    return %c0_i32, %c0_i32_0 : i32, i32
  }
  func.func @transform_6(%arg0: i32) -> (i32, i32) {
    %c0_i32 = arith.constant 0 : i32
    %c0_i32_0 = arith.constant 0 : i32
    %c0_i32_1 = arith.constant 0 : i32
    return %c0_i32, %c0_i32_0 : i32, i32
  }
  func.func @transform_7(%arg0: i32) -> (i32, i32) {
    %c0_i32 = arith.constant 0 : i32
    %c0_i32_0 = arith.constant 0 : i32
    %c0_i32_1 = arith.constant 0 : i32
    return %c0_i32, %c0_i32_0 : i32, i32
  }
  func.func @transform_8(%arg0: i32) -> (i32, i32) {
    %c0_i32 = arith.constant 0 : i32
    %c0_i32_0 = arith.constant 0 : i32
    %c0_i32_1 = arith.constant 0 : i32
    return %c0_i32, %c0_i32_0 : i32, i32
  }
  func.func @transform_9(%arg0: i32) -> (i32, i32) {
    %c0_i32 = arith.constant 0 : i32
    %c0_i32_0 = arith.constant 0 : i32
    %c0_i32_1 = arith.constant 0 : i32
    return %c0_i32, %c0_i32_0 : i32, i32
  }
  func.func @transform_10(%arg0: i32) -> (i32, i32) {
    %c0_i32 = arith.constant 0 : i32
    %c0_i32_0 = arith.constant 0 : i32
    %c0_i32_1 = arith.constant 0 : i32
    return %c0_i32, %c0_i32_0 : i32, i32
  }
  func.func @transform_11(%arg0: i32) -> (i32, i32) {
    %c0_i32 = arith.constant 0 : i32
    %c0_i32_0 = arith.constant 0 : i32
    return %arg0, %c0_i32 : i32, i32
  }
}

</mosaic_0001>

<bundles_post_ra>
// kernel: tpu_custom_call.1
= control target key start
LH: loop header
LB: loop body
LE: loop exit
PB: predicated region body
PF: predicated region fallthrough
CT: control target
= control target key end

     0   :  { %vm79_vm0 = vcmask 130048   ;;  %v747_v1 = vmov 0.0   ;;  %vm748_vm1 = vmmov 0   ;;  %v749_v4 = vmov 0   ;;  %s942_s0 = inlined_call_operand.vmem [shape: f32[8,16], index: 0, kind: input, shape index: {}]   ;;  %s943_s1 = inlined_call_operand.vmem [shape: f32[20,16], index: 1, kind: input, shape index: {}]   ;;  %s944_s2 = inlined_call_operand.vmem [shape: f32[20,1], index: 2, kind: input, shape index: {}]   ;;  %s945_s3 = inlined_call_operand.vmem [shape: f32[10,20], index: 3, kind: input, shape index: {}]   ;;  %s946_s4 = inlined_call_operand.vmem [shape: f32[10,1], index: 4, kind: input, shape index: {}]   ;;  %s947_s5 = inlined_call_operand.vmem [shape: f32[10,10], index: 5, kind: input, shape index: {}]   ;;  %s948_s6 = inlined_call_operand.vmem [shape: f32[10,1], index: 6, kind: input, shape index: {}]   ;;  %s949_s7 = inlined_call_operand.vmem [shape: f32[20,10], index: 7, kind: input, shape index: {}]   ;;  %s950_s8 = inlined_call_operand.vmem [shape: f32[20,1], index: 8, kind: input, shape index: {}]   ;;  %s951_s9 = inlined_call_operand.vmem [shape: f32[20,16], index: 9, kind: input, shape index: {}]   ;;  %s952_s10 = inlined_call_operand.vmem [shape: f32[1,16], index: 10, kind: input, shape index: {}]   ;;  %s953_s11 = inlined_call_operand.hbm [shape: f32[8,16], index: 11, kind: output, shape index: {}]  }
   0x1   :  { %v63_v0 = vld [vmem:[%s942_s0] sm:$0xff]  ;;  %649 = vmatprep.subr.mxu0 %v747_v1  ;;  %651 = vmatprep.mubr.msk.f32.mxu0 %vm748_vm1, %v747_v1  ;;  %v44_v5 = vld [vmem:[%s944_s2 + $0x10] sm:$0xf]  ;;  %v43_v6 = vld [vmem:[%s944_s2 + $0x8] sm:$0xff] }
   0x2   :  { %v42_v2 = vld [vmem:[%s944_s2] sm:$0xff]  ;;  %650 = vmatpush3.xpose.msk.msra.mxu0 %vm79_vm0, %v63_v0  ;;  %721 = vset.pattern.permute.xlu0 %v749_v4 }
   0x3   :  { %v39_v3 = vld [vmem:[%s943_s1] sm:$0xff]  ;;  %66 = vperm.xlu0 %721, %v42_v2   ;;  %722 = vset.pattern.permute.xlu1 %v749_v4 }
   0x4   :  { %76 = vperm.xlu1 %722, %v44_v5  }
   0x5   :  { %16 = vsyncpa [#allocation3], 0  ;;  %652 = vmatmul.mubr.msk.f32.vlgmr.msra.gmra.mrb[0].mxu0 %vm79_vm0, %v39_v3  ;;  %v47_v7 = vld [vmem:[%s946_s4] sm:$0xff]  ;;  %v40_v8 = vld [vmem:[%s943_s1 + $0x8] sm:$0xff]  ;;  %vm185_vm2 = vcmask 162816   ;;  %vm192_vm3 = vcmask 1043456  }
   0x6   :  { %654 = vmatprep.mubr.msk.f32.mxu0 %vm748_vm1, %v747_v1  ;;  %v48_v9 = vld [vmem:[%s946_s4 + $0x8] sm:$0x3]  ;;  %v51_v10 = vld [vmem:[%s948_s6] sm:$0xff]  ;;  %v41_v11 = vld [vmem:[%s943_s1 + $0x10] sm:$0xf]  ;;  %vm283_vm4 = vcmask 80896  }
   0x7   :  { %71 = vperm.xlu0 %721, %v43_v6   ;;  %v52_v12 = vld [vmem:[%s948_s6 + $0x8] sm:$0x3]  ;;  %v56_v13 = vld [vmem:[%s950_s8] sm:$0xff]  ;;  %v58_v15 = vld [vmem:[%s950_s8 + $0x10] sm:$0xf]  ;;  %vm290_vm5 = vcmask 1041408  }
   0x8   :  { %177 = vperm.xlu1 %722, %v47_v7   ;;  %v57_v14 = vld [vmem:[%s950_s8 + $0x8] sm:$0xff]  ;;  %v45_v16 = vld [vmem:[%s945_s3] sm:$0xff]  ;;  %vm750_vm6 = vmmov 1   ;;  %v751_v46 = vmov 0.0|0.0   ;;  %v55_v58 = vld [vmem:[%s949_s7 + $0x10] sm:$0xf] }
   0x9   :  { %655 = vmatmul.mubr.msk.f32.gmra.mrb[2].mxu0 %vm79_vm0, %v40_v8  ;;  %666 = vmatprep.mubr.msk.f32.mxu1 %vm185_vm2, %v45_v16  ;;  %v46_v33 = vld [vmem:[%s945_s3 + $0x8] sm:$0x3]  ;;  %v49_v34 = vld [vmem:[%s947_s5] sm:$0xff]  ;;  %vm882_vm7 = vmpackc.low %vm290_vm5, %vm750_vm6  ;;  %s752_s17 = smov [#allocation2]  }
   0xa   :  { %657 = vmatprep.mubr.msk.f32.mxu0 %vm748_vm1, %v747_v1  ;;  %v50_v45 = vld [vmem:[%s947_s5 + $0x8] sm:$0x3]  ;;  %712 = vmatprep.subr.bf16.mxu0 %v751_v46  ;;  %v53_v56 = vld [vmem:[%s949_s7] sm:$0xff]  ;;  %v61_v62 = vld [vmem:[%s951_s9 + $0x10] sm:$0xf]  ;;  %s602_s4 = sshll.u32 %s752_s17, 4  ;;  %s603_s4 = int_to_ptr.vmem [resolvable:$true] %s602_s4 }
   0xb   :  { %182 = vperm.xlu0 %721, %v48_v9   ;;  %v54_v57 = vld [vmem:[%s949_s7 + $0x8] sm:$0xff]  ;;  %v59_v59 = vld [vmem:[%s951_s9] sm:$0xff]  ;;  %s723_s18 = scalar_lea.vmem %s603_s4, 128  ;;  %p728_p1 = scmp.lt.s32.totalorder %s603_s4, %s603_s4 }
   0xc   :  { %275 = vperm.xlu1 %722, %v51_v10   ;;  %v60_v60 = vld [vmem:[%s951_s9 + $0x8] sm:$0xff]  ;;  %p724_p0 = scmp.ne.s32.totalorder %s603_s4, %s723_s18  ;;  %p729_p2 = scmp.lt.s32.totalorder %s723_s18, %s723_s18 }
   0xd   :  { %658 = vmatmul.mubr.msk.f32.gmra.mrb[4].mxu0 %vm79_vm0, %v41_v11  ;;  %v713_v61 = vpack.c.bf16 %v60_v60, %v59_v59 }
   0xe   :  { %695 = vmatprep.mubr.msk.f32.mxu0 %vm748_vm1, %v747_v1  ;;  %p730_p3 = por %p729_p2, %p728_p1 }
   0xf   :  { %280 = vperm.xlu0 %721, %v52_v12   ;;  %714 = vmatpush3.bf16.msra.mxu0 %v713_v61 }
  0x10   :  { %373 = vperm.xlu1 %722, %v56_v13   ;;  %693 = vmatprep.subr.mxu0 %v747_v1  ;;  %p731_p4 = pnand %p730_p3, %p724_p0 }
  0x13   :  { %378 = vperm.xlu0 %721, %v57_v14   ;;  %694 = vmatpush3.msk.msra.mxu0 %vm192_vm3, %v61_v62 }
  0x14   :  { %383 = vperm.xlu1 %722, %v58_v15   ;;  %v624_v15 = vld [vmem:[%s952_s10] ss:$0 sm:$0xff] }
  0x82   :  { %v67_v17 = vpop.permute.xlu0 %66 }
  0x83   :  { %v77_v27 = vpop.permute.xlu1 %76 }
  0x86   :  { %v72_v21 = vpop.permute.xlu0 %71 }
  0x87   :  { %v178_v37 = vpop.permute.xlu1 %177 }
  0x8a   :  { %v183_v35 = vpop.permute.xlu0 %182 }
  0x8b   :  { %v276_v49 = vpop.permute.xlu1 %275 }
  0x8e   :  { %v281_v47 = vpop.permute.xlu0 %280 }
  0x8f   :  { %v374_v63 = vpop.permute.xlu1 %373 }
  0x92   :  { %v379_v5 = vpop.permute.xlu0 %378 }
  0x93   :  { %v384_v10 = vpop.permute.xlu1 %383 }
  0xd8   :  { %v158_v18 = vpop.f32.mrb[0].mxu0 }
  0xd9   :  { %v653_v19 = vpop.f32.mrb[1].mxu0  ;;  %v159_v20 = vadd.f32 %v158_v18, %v67_v17 }
  0xdb   :  { %v172_v25 = vmax.f32 %v159_v20, 0.0 }
  0xdc   :  { %v163_v22 = vpop.f32.mrb[2].mxu0 }
  0xdd   :  { %v164_v23 = vadd.f32 %v163_v22, %v72_v21  ;;  %v656_v24 = vpop.f32.mrb[3].mxu0 }
  0xdf   :  { %v173_v26 = vmax.f32 %v164_v23, 0.0 }
  0xe0   :  { %v168_v28 = vpop.f32.mrb[4].mxu0 }
  0xe1   :  { %v169_v29 = vadd.f32 %v168_v28, %v77_v27  ;;  %v659_v30 = vpop.f32.mrb[5].mxu0  ;;  %v698_v31 = vpack.c.bf16 %v173_v26, %v172_v25 }
  0xe3   :  { %v174_v32 = vmax.f32 %v169_v29, 0.0  ;;  %699 = vmatprep.subr.bf16.mxu1 %v698_v31 }
  0xe4   :  { %701 = vmatpush3.bf16.msra.mxu1 %v698_v31 }
  0xe5   :  { %664 = vmatprep.subr.msk.mxu1 %vm192_vm3, %v174_v32 }
  0xe8   :  { %665 = vmatpush3.msk.msra.mxu1 %vm192_vm3, %v174_v32 }
  0xe9   :  { %667 = vmatmul.mubr.msk.f32.vlgmr.msra.gmra.mrb[0].mxu1 %vm185_vm2, %v46_v33 }
  0xea   :  { %673 = vmatprep.mubr.msk.f32.mxu1 %vm283_vm4, %v49_v34 }
 0x1bc   :  { %v668_v36 = vpop.f32.mrb[0].mxu1 }
 0x1bd   :  { %v268_v38 = vadd.f32 %v668_v36, %v183_v35  ;;  %v262_v39 = vpop.f32.mrb[1].mxu1 }
 0x1be   :  { %v263_v40 = vadd.f32 %v262_v39, %v178_v37 }
 0x1bf   :  { %v272_v41 = vmax.f32 %v268_v38, 0.0 }
 0x1c0   :  { %v271_v42 = vmax.f32 %v263_v40, 0.0 }
 0x1c2   :  { %v702_v44 = vpack.c.bf16 %v272_v41, %v271_v42 }
 0x1c4   :  { %704 = vmatprep.subr.msk.bf16.mxu1 %vm882_vm7, %v702_v44 }
 0x1c5   :  { %707 = vmatpush3.bf16.msk.msra.mxu1 %vm882_vm7, %v702_v44 }
 0x1c6   :  { %708 = vmatprep.subr.bf16.mxu1 %v751_v46 }
 0x1c8   :  { %674 = vmatmul.mubr.msk.f32.vlgmr.msra.gmra.mrb[2].mxu1 %vm283_vm4, %v50_v45 }
 0x1c9   :  { %680 = vmatprep.mubr.msk.f32.mxu1 %vm748_vm1, %v747_v1 }
 0x29b   :  { %v675_v48 = vpop.f32.mrb[2].mxu1 }
 0x29c   :  { %v366_v50 = vadd.f32 %v675_v48, %v281_v47  ;;  %v360_v51 = vpop.f32.mrb[3].mxu1 }
 0x29d   :  { %v361_v52 = vadd.f32 %v360_v51, %v276_v49 }
 0x29e   :  { %v370_v53 = vmax.f32 %v366_v50, 0.0 }
 0x29f   :  { %v369_v54 = vmax.f32 %v361_v52, 0.0 }
 0x2a1   :  { %v709_v55 = vpack.c.bf16 %v370_v53, %v369_v54 }
 0x2a3   :  { %711 = vmatpush3.bf16.msk.msra.mxu1 %vm882_vm7, %v709_v55 }
 0x2a6   :  { %681 = vmatmul.mubr.msk.f32.vlgmr.msra.gmra.mrb[4].mxu1 %vm283_vm4, %v53_v56 }
 0x2a7   :  { %683 = vmatprep.mubr.msk.f32.mxu1 %vm748_vm1, %v747_v1 }
 0x2aa   :  { %684 = vmatmul.mubr.msk.f32.gmra.mrb[6].mxu1 %vm283_vm4, %v54_v57 }
 0x2ab   :  { %686 = vmatprep.mubr.msk.f32.mxu1 %vm748_vm1, %v747_v1 }
 0x2ae   :  { %687 = vmatmul.mubr.msk.f32.gmra.mrb[8].mxu1 %vm283_vm4, %v55_v58 }
 0x379   :  { %v464_v0 = vpop.f32.mrb[4].mxu1 }
 0x37a   :  { %v465_v2 = vadd.f32 %v464_v0, %v374_v63  ;;  %v682_v3 = vpop.f32.mrb[5].mxu1 }
 0x37c   :  { %v478_v4 = vmax.f32 %v465_v2, 0.0 }
 0x37d   :  { %v469_v6 = vpop.f32.mrb[6].mxu1 }
 0x37e   :  { %v470_v7 = vadd.f32 %v469_v6, %v379_v5  ;;  %487 = vxpose.xlu0.b32.start [1/3] (short) (narrow) %v478_v4, 8  ;;  %v685_v8 = vpop.f32.mrb[7].mxu1 }
 0x380   :  { %v479_v9 = vmax.f32 %v470_v7, 0.0 }
 0x381   :  { %v474_v11 = vpop.f32.mrb[8].mxu1 }
 0x382   :  { %v475_v1 = vadd.f32 %v474_v11, %v384_v10  ;;  %488 = vxpose.xlu0.b32.cont [2/3] (short) (narrow) %v479_v9, 8  ;;  %v688_v12 = vpop.f32.mrb[9].mxu1 }
 0x384   :  { %v480_v13 = vmax.f32 %v475_v1, 0.0 }
 0x386   :  { %489 = vxpose.xlu0.b32.end [3/3] (short) (narrow) %v480_v13, 8 }
 0x3fe   :  { %v503_v14 = vpop.trf.xlu0 }
 0x3ff   :  { %696 = vmatmul.mubr.msk.f32.vlgmr.msra.gmra.mrb[6].mxu0 %vm185_vm2, %v503_v14 }
 0x4d2   :  { %v591_v16 = vpop.f32.mrb[6].mxu0 }
 0x4d3   :  { %v592_v17 = vadd.f32 %v624_v15, %v591_v16  ;;  %v697_v18 = vpop.f32.mrb[7].mxu0 }
 0x4d5   :  { %595 = vst.msk [vmem:[#allocation2] sm:$0xff] %vm79_vm0, %v592_v17 }
 0x4d6   :  { %734 = shalt.err (!%p731_p4)
}
 0x4d7   :  { %s735_s1 = scalar_lea.hbm %s953_s11, 128 }
 0x4d8   :  { %p736_p5 = scmp.ne.s32.totalorder %s953_s11, %s735_s1  ;;  %p739_p6 = scmp.lt.u32.totalorder %s735_s1, %s953_s11 }
 0x4da   :  { %p741_p7 = pnand %p739_p6, %p736_p5 }
 0x4dc   :  { %744 = shalt.err (!%p741_p7)
}
 0x4dd   :  { %605 = dma.vmem_to_hbm [thread:$0]  %s603_s4, 128, %s953_s11, [#allocation3]  }
 0x4de   :  { %745 = dma.done.wait [#allocation3], 128  }
 0x4df   :  { %746 = vsyncadd [#allocation3], 4294967168 }
 0x4e0   :  { %609 = vsyncpa [#allocation3], 1 }

</bundles_post_ra>
